<compile_context>
chip_gen: v5e
topology: v5e:2x2
jax: 0.10.0
libtpu: 0.0.40
codegen_flags: <defaults>
</compile_context>

<pallas_src>
import jax
import jax.numpy as jnp
import numpy as np
from jax.experimental import pallas as pl
from jax.experimental.pallas import tpu as pltpu


def _round_up(x, m):
    return ((x + m - 1) // m) * m


def _vmem_capacity_bytes():
    """Generation-aware VMEM capacity (v5e/v6e: 128 MiB; v7x: 64 MiB per TC)."""
    try:
        return int(pltpu.get_tpu_info().vmem_capacity_bytes)
    except Exception:
        return 64 * 1024 * 1024  # conservative fallback (safe on every gen)


# ----------------------------------------------------------------------------
# Kernels
# ----------------------------------------------------------------------------
def _linear_kernel_single(x_ref, w_ref, b_ref, o_ref):
    """Single K pass: x:(TM,K) w:(K,TN) b:(1,TN) o:(TM,TN)."""
    acc = jnp.dot(x_ref[...], w_ref[...], preferred_element_type=jnp.float32)
    o_ref[...] = (acc + b_ref[...].astype(jnp.float32)).astype(o_ref.dtype)


def _linear_kernel_acc(x_ref, w_ref, b_ref, o_ref, acc_ref):
    """K-tiled: x:(TM,TK) w:(TK,TN) b:(1,TN) o:(TM,TN) acc:(TM,TN) f32."""
    k = pl.program_id(2)

    @pl.when(k == 0)
    def _():
        acc_ref[...] = jnp.zeros_like(acc_ref)

    acc_ref[...] += jnp.dot(x_ref[...], w_ref[...],
                            preferred_element_type=jnp.float32)

    @pl.when(k == pl.num_programs(2) - 1)
    def _():
        o_ref[...] = (acc_ref[...]
                      + b_ref[...].astype(jnp.float32)).astype(o_ref.dtype)


# ----------------------------------------------------------------------------
# Tile selection
# ----------------------------------------------------------------------------
def _choose_tiles(M, K, N, x_bytes, w_bytes, o_bytes, vmem_budget):
    def fits(tm, tn, tk):
        x_blk = tm * tk * x_bytes
        w_blk = tk * tn * w_bytes
        o_blk = tm * tn * o_bytes
        b_blk = tn * 4
        acc = tm * tn * 4
        # every auto-pipelined block is double-buffered by default
        return 2 * (x_blk + w_blk + o_blk + b_blk) + acc <= vmem_budget

    n_lane = _round_up(N, 128)
    # Small-M (weight-streaming) regime: wider N tiles amortize the ~0.35us
    # grid-step overhead and keep output stores lane-dense (unmasked vst).
    tn_cap = 2048 if M <= 256 else 512
    tile_n = min(n_lane, tn_cap)
    tile_m = min(_round_up(M, 8), 512)
    tile_k = K  # single K pass whenever the full-K blocks fit in VMEM

    # Shrink tile_n first (always a multiple of 128).
    while tile_n > 128 and not fits(tile_m, tile_n, tile_k):
        tile_n = max(128, _round_up((tile_n + 1) // 2, 128))

    # K-tiling with an f32 accumulator bounds VMEM for large in_features
    # (required once K*(2*tile_m + tile_n)*dsize exceeds the budget, e.g. v7x).
    if not fits(tile_m, tile_n, tile_k):
        tile_k = 1024
        while tile_k > 128 and not fits(tile_m, tile_n, tile_k):
            tile_k //= 2

    # Last resort: shrink tile_m.
    while tile_m > 8 and not fits(tile_m, tile_n, tile_k):
        tile_m = max(8, _round_up((tile_m + 1) // 2, 8))

    # v7x has 2 TensorCores: don't collapse a big problem into a single
    # program (one TC would sit idle).  Tiny problems are left alone.
    m_tiles = _round_up(M, tile_m) // tile_m
    n_tiles = _round_up(N, tile_n) // tile_n
    if m_tiles * n_tiles == 1 and M * N * K >= (1 << 24):
        if tile_n >= 256:
            tile_n = _round_up(tile_n // 2, 128)
        elif tile_m >= 16:
            tile_m = _round_up(tile_m // 2, 8)

    return tile_m, tile_n, tile_k


# ----------------------------------------------------------------------------
# Wrapper
# ----------------------------------------------------------------------------
def linear_layer(x, w_t, b, *, out_features=None, vmem_limit_bytes=None):
    """y = x @ w_t + b for x of shape (..., K).

    w_t: (K, Nw) transposed weight, Nw may already be lane-padded (mult of 128)
    b:   (Nw,)   bias (padded entries must be zero)
    out_features: true N (trailing padded columns are sliced off). Defaults to Nw.
    """
    orig_shape = x.shape
    K = orig_shape[-1]
    x2 = x.reshape(-1, K)
    M = x2.shape[0]
    K2, Nw = w_t.shape
    assert K == K2, "in_features mismatch"
    N = Nw if out_features is None else out_features
    out_dtype = x.dtype

    # Weights are stored at rest in the matmul dtype (bf16/int8/fp8 for speed,
    # f32 here); cast the (much smaller) activation to match instead of
    # re-casting the full weight every call.
    if x2.dtype != w_t.dtype:
        x2 = x2.astype(w_t.dtype)

    cap = _vmem_capacity_bytes()
    if vmem_limit_bytes is None:
        vmem_limit_bytes = min(int(0.90 * cap), 112 * 1024 * 1024)
    vmem_budget = min(int(0.75 * cap), vmem_limit_bytes)

    x_bytes = jnp.dtype(x2.dtype).itemsize
    w_bytes = jnp.dtype(w_t.dtype).itemsize
    o_bytes = jnp.dtype(out_dtype).itemsize

    tile_m, tile_n, tile_k = _choose_tiles(
        M, K, Nw, x_bytes, w_bytes, o_bytes, vmem_budget)

    m_pad = _round_up(M, tile_m)
    n_pad = _round_up(Nw, tile_n)
    k_pad = _round_up(K, tile_k)

    # Pad only when needed (pre-padded params + aligned batch -> no extra pass).
    if m_pad != M or k_pad != K:
        x2 = jnp.pad(x2, ((0, m_pad - M), (0, k_pad - K)))
    w_p = w_t if (n_pad == Nw and k_pad == K) else jnp.pad(
        w_t, ((0, k_pad - K), (0, n_pad - Nw)))
    b_p = b if n_pad == Nw else jnp.pad(b, (0, n_pad - Nw))
    b2 = b_p.reshape(1, n_pad)

    m_tiles = m_pad // tile_m
    n_tiles = n_pad // tile_n
    k_tiles = k_pad // tile_k

    # Grid order by operand size: N-outermost keeps the (K,tile_n) weight block
    # resident across the inner M loop (good when the weight dominates, N>=M);
    # M-outermost streams the big activation once when M >> N.
    n_outer = N >= M

    if k_tiles == 1:
        kernel = _linear_kernel_single
        scratch = ()
        if n_outer:
            grid = (n_tiles, m_tiles)
            x_map = lambda n, m: (m, 0)
            w_map = lambda n, m: (0, n)
            b_map = lambda n, m: (0, n)
            o_map = lambda n, m: (m, n)
        else:
            grid = (m_tiles, n_tiles)
            x_map = lambda m, n: (m, 0)
            w_map = lambda m, n: (0, n)
            b_map = lambda m, n: (0, n)
            o_map = lambda m, n: (m, n)
        semantics = ("parallel", "parallel")
    else:
        kernel = _linear_kernel_acc
        scratch = (pltpu.VMEM((tile_m, tile_n), jnp.float32),)
        if n_outer:
            grid = (n_tiles, m_tiles, k_tiles)
            x_map = lambda n, m, k: (m, k)
            w_map = lambda n, m, k: (k, n)
            b_map = lambda n, m, k: (0, n)
            o_map = lambda n, m, k: (m, n)
        else:
            grid = (m_tiles, n_tiles, k_tiles)
            x_map = lambda m, n, k: (m, k)
            w_map = lambda m, n, k: (k, n)
            b_map = lambda m, n, k: (0, n)
            o_map = lambda m, n, k: (m, n)
        semantics = ("parallel", "parallel", "arbitrary")

    cost = pl.CostEstimate(
        flops=2 * M * N * K,
        bytes_accessed=M * K * x_bytes + K * N * w_bytes + M * N * o_bytes + N * 4,
        transcendentals=0,
    )

    out = pl.pallas_call(
        kernel,
        out_shape=jax.ShapeDtypeStruct((m_pad, n_pad), out_dtype),
        grid_spec=pltpu.PrefetchScalarGridSpec(
            num_scalar_prefetch=0,
            grid=grid,
            in_specs=[
                pl.BlockSpec((tile_m, tile_k), x_map),
                pl.BlockSpec((tile_k, tile_n), w_map),   # default double buffer
                pl.BlockSpec((1, tile_n), b_map),
            ],
            out_specs=pl.BlockSpec((tile_m, tile_n), o_map),
            scratch_shapes=scratch,
        ),
        compiler_params=pltpu.CompilerParams(
            dimension_semantics=semantics,
            vmem_limit_bytes=int(vmem_limit_bytes),
        ),
        cost_estimate=cost,
    )(x2, w_p, b2)

    if m_pad != M or n_pad != N:
        out = out[:M, :N]
    return out.reshape(orig_shape[:-1] + (N,))


# ----------------------------------------------------------------------------
# Parameter init (matches the PyTorch module) -- padded ONCE, not per call.
# ----------------------------------------------------------------------------
def init_linear_layer_params(key, in_features, out_features, *, dtype=jnp.float32):
    """PyTorch LinearLayer: weight ~ U(-1/in, 1/in) (init_weights); bias keeps
    the nn.Linear default U(-1/sqrt(in), 1/sqrt(in)).  Returns the weight
    transposed to (in, out) and lane-padded (out -> multiple of 128) so the
    kernel wrapper never pads/casts the weight per call.  Store in the matmul
    dtype at rest (e.g. bf16) for bandwidth-bound shapes."""
    kw, kb = jax.random.split(key)
    bound_w = 1.0 / in_features
    w_t = jax.random.uniform(kw, (in_features, out_features), jnp.float32,
                             minval=-bound_w, maxval=bound_w)
    bound_b = 1.0 / np.sqrt(in_features)
    b = jax.random.uniform(kb, (out_features,), jnp.float32,
                           minval=-bound_b, maxval=bound_b)
    n_pad = _round_up(out_features, 128)
    if n_pad != out_features:
        w_t = jnp.pad(w_t, ((0, 0), (0, n_pad - out_features)))
        b = jnp.pad(b, (0, n_pad - out_features))
    return w_t.astype(dtype), b.astype(dtype)


if __name__ == "__main__":
    key = jax.random.PRNGKey(0)
    k_x, k_p = jax.random.split(key)

    batch = 16
    in_features = 32
    out_features = 64

    x = jax.random.uniform(k_x, (batch, in_features), jnp.float32,
                           minval=-1.0, maxval=1.0)
    w_t, b = init_linear_layer_params(k_p, in_features, out_features)

    out = linear_layer(x, w_t, b, out_features=out_features)
    out = jax.block_until_ready(out)

    # Pure-JAX reference check (slice off the lane padding of the stored params).
    ref = x @ w_t[:, :out_features] + b[:out_features][None, :]
    np.testing.assert_allclose(np.asarray(out), np.asarray(ref),
                               rtol=1e-5, atol=1e-5)

    print("KERNEL_OK")
</pallas_src>

<mosaic_0001>
module attributes {stable_mosaic.version = 11 : i64} {
  func.func @_linear_kernel_single(%arg0: i32, %arg1: i32, %arg2: memref<16x32xf32, #tpu.memory_space<vmem>>, %arg3: memref<32x128xf32, #tpu.memory_space<vmem>>, %arg4: memref<1x128xf32, #tpu.memory_space<vmem>>, %arg5: memref<16x128xf32, #tpu.memory_space<vmem>>) attributes {dimension_semantics = [#tpu.dimension_semantics<parallel>, #tpu.dimension_semantics<parallel>], iteration_bounds = array<i64: 1, 1>, scalar_prefetch = 0 : i64, scratch_operands = 0 : i64, tpu.core_type = #tpu.core_type<tc>, window_params = [{transform_indices = @transform_0, window_bounds = array<i64: 16, 32>}, {transform_indices = @transform_1, window_bounds = array<i64: 32, 128>}, {transform_indices = @transform_2, window_bounds = array<i64: 1, 128>}, {transform_indices = @transform_3, window_bounds = array<i64: 16, 128>}]} {
    %c0 = arith.constant 0 : index
    %c0_0 = arith.constant 0 : index
    %0 = vector.load %arg2[%c0, %c0_0] : memref<16x32xf32, #tpu.memory_space<vmem>>, vector<16x32xf32>
    %c0_1 = arith.constant 0 : index
    %c0_2 = arith.constant 0 : index
    %1 = vector.load %arg3[%c0_1, %c0_2] : memref<32x128xf32, #tpu.memory_space<vmem>>, vector<32x128xf32>
    %cst = arith.constant dense<0.000000e+00> : vector<16x128xf32>
    %2 = tpu.matmul %0, %1, %cst {dimension_numbers = #tpu.dot_dimension_numbers<[1], [0], [0], [1], [0, 0, 1, 1], [], []>} : vector<16x32xf32>, vector<32x128xf32>, vector<16x128xf32> -> vector<16x128xf32>
    %c0_3 = arith.constant 0 : index
    %c0_4 = arith.constant 0 : index
    %3 = vector.load %arg4[%c0_3, %c0_4] : memref<1x128xf32, #tpu.memory_space<vmem>>, vector<1x128xf32>
    %4 = vector.broadcast %3 : vector<1x128xf32> to vector<16x128xf32>
    %5 = arith.addf %2, %4 : vector<16x128xf32>
    %c0_5 = arith.constant 0 : index
    %c0_6 = arith.constant 0 : index
    %6 = vector.load %arg5[%c0_5, %c0_6] : memref<16x128xf32, #tpu.memory_space<vmem>>, vector<16x128xf32>
    tpu.vector_store %arg5[%c0_5, %c0_6], %5 {strides = array<i32>} : memref<16x128xf32, #tpu.memory_space<vmem>>, vector<16x128xf32>,
    return
  }
  func.func @transform_0(%arg0: i32, %arg1: i32) -> (i32, i32) {
    %c0_i32 = arith.constant 0 : i32
    %c0_i32_0 = arith.constant 0 : i32
    return %arg1, %c0_i32 : i32, i32
  }
  func.func @transform_1(%arg0: i32, %arg1: i32) -> (i32, i32) {
    %c0_i32 = arith.constant 0 : i32
    %c0_i32_0 = arith.constant 0 : i32
    return %c0_i32, %arg0 : i32, i32
  }
  func.func @transform_2(%arg0: i32, %arg1: i32) -> (i32, i32) {
    %c0_i32 = arith.constant 0 : i32
    %c0_i32_0 = arith.constant 0 : i32
    return %c0_i32, %arg0 : i32, i32
  }
  func.func @transform_3(%arg0: i32, %arg1: i32) -> (i32, i32) {
    %c0_i32 = arith.constant 0 : i32
    return %arg1, %arg0 : i32, i32
  }
}

</mosaic_0001>

<bundles_post_ra>
// kernel: tpu_custom_call.1
= control target key start
LH: loop header
LB: loop body
LE: loop exit
PB: predicated region body
PF: predicated region fallthrough
CT: control target
= control target key end

     0   :  { %8 = vsyncpa [#allocation3], 0  ;;  %s245_s0 = inlined_call_operand.hbm [shape: f32[16,32], index: 0, kind: input, shape index: {}]   ;;  %s246_s1 = inlined_call_operand.hbm [shape: f32[32,128], index: 1, kind: input, shape index: {}]   ;;  %s247_s2 = inlined_call_operand.vmem [shape: f32[1,128], index: 2, kind: input, shape index: {}]   ;;  %s248_s3 = inlined_call_operand.hbm [shape: f32[16,128], index: 3, kind: output, shape index: {}]  }
   0x1   :  { %9 = vsyncpa [#allocation6], 0 }
   0x2   :  { %10 = vsyncpa [#allocation4], 0  ;;  %s15_s14 = sshll.u32 %s245_s0, 4  ;;  %s199_s15 = smov [#allocation2]   ;;  %s16_s14 = int_to_ptr.hbm [resolvable:$true] %s15_s14 }
   0x3   :  { %s17_s16 = sshll.u32 %s199_s15, 4  ;;  %s28_s19 = sshll.u32 %s246_s1, 4  ;;  %s18_s16 = int_to_ptr.vmem [resolvable:$true] %s17_s16  ;;  %s29_s19 = int_to_ptr.hbm [resolvable:$true] %s28_s19 }
   0x4   :  { %s200_s20 = smov 128   ;;  %s201_s21 = smov 8  }
   0x5   :  { %23 = dma.hbm_to_vmem [thread:$0]  %s16_s14, 256, %s18_s16, [#allocation3], %s200_s20, %s200_s20, %s201_s21  }
   0x6   :  { %s202_s22 = smov [#allocation5]  }
   0x7   :  { %s30_s23 = sshll.u32 %s202_s22, 4  ;;  %s31_s23 = int_to_ptr.vmem [resolvable:$true] %s30_s23 }
   0x8   :  { %36 = dma.hbm_to_vmem [thread:$0]  %s29_s19, 512, %s31_s23, [#allocation6], %s200_s20, %s200_s20, %s201_s21  }
   0x9   :  { %193 = dma.done.wait [#allocation3], 256  }
   0xa   :  { %194 = vsyncadd [#allocation3], 4294967040 }
   0xb   :  { %195 = dma.done.wait [#allocation6], 512  }
   0xc   :  { %196 = vsyncadd [#allocation6], 4294966784  ;;  %v52_v0 = vld [vmem:[#allocation5 + $0x18] sm:$0xff]  ;;  %v51_v1 = vld [vmem:[#allocation5 + $0x10] sm:$0xff]  ;;  %vm57_vm0 = vcmask 261120   ;;  %s203_s24 = smov [#allocation7]  }
   0xd   :  { %76 = vmatpush.msra.mxu0 %v52_v0  ;;  %111 = vmatpush.msra.mxu1 %v52_v0  ;;  %v50_v2 = vld [vmem:[#allocation5 + $0x8] sm:$0xff]  ;;  %v49_v3 = vld [vmem:[#allocation5] sm:$0xff]  ;;  %v47_v4 = vld [vmem:[#allocation2] sm:$0xff]  ;;  %s93_s25 = sshll.u32 %s203_s24, 4  ;;  %s95_s28 = sshll.u32 %s248_s3, 4  ;;  %s94_s25 = int_to_ptr.vmem [resolvable:$true] %s93_s25  ;;  %s96_s28 = int_to_ptr.hbm [resolvable:$true] %s95_s28 }
   0xe   :  { %v48_v5 = vld [vmem:[#allocation2 + $0x8] sm:$0xff]  ;;  %v120_v6 = vld [vmem:[%s247_s2] ss:$0 sm:$0xff] }
   0xf   :  { %77 = vmatpush.msra.mxu0 %v51_v1  ;;  %112 = vmatpush.msra.mxu1 %v51_v1 }
  0x11   :  { %78 = vmatpush.msra.mxu0 %v50_v2  ;;  %113 = vmatpush.msra.mxu1 %v50_v2 }
  0x13   :  { %79 = vmatpush.msra.mxu0 %v49_v3  ;;  %114 = vmatpush.msra.mxu1 %v49_v3 }
  0x14   :  { %109 = vmatmul.msk.f32.vlgmr.msra.gmra.mxu0 %vm57_vm0, %v47_v4  ;;  %110 = vmatmul.msk.f32.vlgmr.msra.gmra.mxu1 %vm57_vm0, %v48_v5 }
  0x91   :  { %v81_v7 = vpop.f32.mrf.mxu0  ;;  %v84_v8 = vpop.f32.mrf.mxu1 }
  0x92   :  { %v82_v9 = vadd.f32 %v120_v6, %v81_v7  ;;  %v85_v10 = vadd.f32 %v120_v6, %v84_v8 }
  0x94   :  { %87 = vst [vmem:[#allocation7] sm:$0xff] %v82_v9 }
  0x95   :  { %88 = vst [vmem:[#allocation7 + $0x8] sm:$0xff] %v85_v10 }
  0x96   :  { %101 = dma.vmem_to_hbm [thread:$0]  %s94_s25, 256, %s96_s28, [#allocation4], %s200_s20, %s200_s20, %s201_s21  }
  0x97   :  { %197 = dma.done.wait [#allocation4], 256  }
  0x98   :  { %198 = vsyncadd [#allocation4], 4294967040 }
  0x99   :  { %106 = vsyncpa [#allocation3], 1 }
  0x9a   :  { %107 = vsyncpa [#allocation6], 1 }
  0x9b   :  { %108 = vsyncpa [#allocation4], 1 }

</bundles_post_ra>
